<compile_context>
chip_gen: v6e
topology: v6e:2x2x1
jax: 0.10.0
libtpu: 0.0.40
codegen_flags: <defaults>
</compile_context>

<pallas_src>
import math

import jax
import jax.numpy as jnp
from jax.experimental import pallas as pl
from jax.experimental.pallas import tpu as pltpu

_LANES = 128
_SUBLANES = 8
_HALLEY_ITERS = 2        # in-kernel iterations (cubic convergence + good init)
_REF_HALLEY_ITERS = 12   # "gold" pure-JAX reference iterations
_TINY = 1e-30
_E = math.e


# ----------------------------- Lambert W (kernel) -----------------------------

def _lambertw0_init_kernel(y):
    """Initial guess, max abs error ~0.02 over y in [-1/e, inf):
       - branch-point series (3rd order) for y < -0.27
       - Winitzki asymptotic  w0 = L*(1 - log1p(L)/(2+L)), L = log1p(y), otherwise."""
    # branch-point series (valid/accurate near y = -1/e)
    p = jnp.sqrt(jnp.maximum(2.0 * _E * y + 2.0, 0.0))
    w_branch = -1.0 + p * (1.0 + p * (-1.0 / 3.0 + p * (11.0 / 72.0)))
    # Winitzki form (y > -1/e > -1, so log1p is always finite -> no NaN in unselected lanes)
    L = jnp.log1p(y)
    L2 = jnp.log1p(L)
    r = pl.reciprocal(2.0 + L, approx=True)
    w_win = L - L * L2 * r
    return jnp.where(y < -0.27, w_branch, w_win)


def _lambertw0_kernel(y):
    """Principal-branch Lambert W: good init + 2 Halley steps.
       den = 2 e^w (w+1)^2 - (w+2) f >= 0 whenever w >= -1 and y >= -1/e, so a
       one-sided maximum() guard is safe; w is clamped to >= -1 after each step."""
    w = _lambertw0_init_kernel(y)
    for _ in range(_HALLEY_ITERS):
        ew = jnp.exp(w)
        f = w * ew - y
        wp1 = w + 1.0
        num = 2.0 * f * wp1
        den = 2.0 * ew * wp1 * wp1 - (w + 2.0) * f
        den = jnp.maximum(den, _TINY)
        w = w - num * pl.reciprocal(den, approx=True)
        w = jnp.maximum(w, -1.0)          # principal branch; keeps den >= 0 next iter
    return w


# --------------------------- Lambert W (reference) ----------------------------

def _lambertw0_init_ref(y):
    p = jnp.sqrt(jnp.maximum(2.0 * (_E * y + 1.0), 0.0))
    w_branch = -1.0 + p * (1.0 + p * (-1.0 / 3.0 + p * (11.0 / 72.0)))
    return jnp.where(y < 0.0, w_branch, jnp.log1p(y))


def _lambertw0_ref(y):
    """Pure-JAX 'gold' Lambert W (exact divides, extra iterations) for validation."""
    w = _lambertw0_init_ref(y)
    for _ in range(_REF_HALLEY_ITERS):
        ew = jnp.exp(w)
        f = w * ew - y
        wp1 = w + 1.0
        num = 2.0 * f * wp1
        den = 2.0 * ew * wp1 * wp1 - (w + 2.0) * f
        den = jnp.where(jnp.abs(den) < 1e-20,
                        jnp.where(den < 0.0, -1e-20, 1e-20), den)
        w = w - num / den
    return w


# --------------------------------- kernel -------------------------------------

def _make_superloss_kernel(tau, lam, n_valid, tile_rows, tiles_per_chunk, needs_mask):
    # NOTE: every closed-over value is a Python scalar (no traced constants).
    tau = float(tau)
    lam = float(lam)
    half_inv_lam = 0.5 / lam
    y_floor = -1.0 / math.e                     # == 0.5 * (-2/e)
    boundary_tile = n_valid // (tile_rows * _LANES)   # first tile containing padding
    full_rows = n_valid // _LANES
    rem = n_valid % _LANES

    def kernel(x_ref, t_ref, out_ref):
        ci = pl.program_id(0)        # "parallel" chunk axis (megacore on v7x)
        ti = pl.program_id(1)        # "arbitrary" reduction axis (pipelined tiles)

        @pl.when(ti == 0)
        def _init():
            out_ref[...] = jnp.zeros_like(out_ref)

        x = x_ref[...].astype(jnp.float32)
        t = t_ref[...].astype(jnp.float32)
        d = x - t
        l_i = d * d                                  # elementwise MSE (no reduction)
        lmt = l_i - tau
        y = jnp.maximum(y_floor, lmt * half_inv_lam)

        w = _lambertw0_kernel(y)                     # log(sigma) = -w
        sigma = jnp.exp(-w)
        w2 = w * w
        loss = lmt * sigma + (w2 if lam == 1.0 else lam * w2)

        def _accum(v):
            # Fold the tile to one (8,128) vreg with VPU adds; accumulate into the
            # resident output block (written back to HBM once per chunk).
            part = v.reshape(tile_rows // _SUBLANES, _SUBLANES, _LANES).sum(axis=0)
            out_ref[...] += part[None]

        if needs_mask:
            gt = ci * tiles_per_chunk + ti           # global tile index

            @pl.when(gt < boundary_tile)             # fully-valid tiles: no mask ops
            def _full():
                _accum(loss)

            @pl.when(gt >= boundary_tile)            # boundary / pure-padding tiles
            def _masked():
                row0 = gt * tile_rows
                rows = row0 + jax.lax.broadcasted_iota(jnp.int32, (tile_rows, _LANES), 0)
                cols = jax.lax.broadcasted_iota(jnp.int32, (tile_rows, _LANES), 1)
                valid = (rows < full_rows) | ((rows == full_rows) & (cols < rem))
                _accum(jnp.where(valid, loss, 0.0))
        else:
            _accum(loss)

    return kernel


# -------------------------------- wrapper --------------------------------------

def _default_chunks(tiles_total):
    if tiles_total < 2:
        return 1
    two_tc = False
    try:
        kind = jax.devices()[0].device_kind.lower()
        two_tc = "7" in kind          # v7x: 2 TensorCores per chip
    except Exception:
        two_tc = False
    if two_tc:
        return 2
    # single-TC chips: use 2 chunks only when it costs no extra pure-padding tile
    return 2 if tiles_total % 2 == 0 else 1


def superloss_pallas(logits, targets, C=10.0, lam=1.0, batch_size=1,
                     tile_rows=4096, num_chunks=None):
    assert logits.shape == targets.shape
    tau = math.log(C)

    n = int(logits.size)
    if n == 0:
        return jnp.zeros((), jnp.float32)

    # Keep native floating dtype (upcast in-kernel); non-floats go to f32 up front.
    if not jnp.issubdtype(jnp.asarray(logits).dtype, jnp.floating):
        logits = jnp.asarray(logits).astype(jnp.float32)
    if not jnp.issubdtype(jnp.asarray(targets).dtype, jnp.floating):
        targets = jnp.asarray(targets).astype(jnp.float32)

    rows_needed = -(-n // _LANES)
    # tile rows: multiple of 8 sublanes, large default (2 inputs x 2 buffers x 2 MiB = 8 MiB)
    tile_r = min(int(tile_rows),
                 max(_SUBLANES, -(-rows_needed // _SUBLANES) * _SUBLANES))
    tiles_total = -(-rows_needed // tile_r)
    if num_chunks is None:
        chunks = _default_chunks(tiles_total)
    else:
        chunks = max(1, min(int(num_chunks), tiles_total))
    tiles_per_chunk = -(-tiles_total // chunks)
    rows_padded = chunks * tiles_per_chunk * tile_r
    total_padded = rows_padded * _LANES
    needs_mask = total_padded != n

    x = logits.reshape(-1)
    t = targets.reshape(-1)
    if total_padded > n:
        x = jnp.pad(x, (0, total_padded - n))
        t = jnp.pad(t, (0, total_padded - n))
    x2d = x.reshape(rows_padded, _LANES)
    t2d = t.reshape(rows_padded, _LANES)

    kernel = _make_superloss_kernel(tau, lam, n, tile_r, tiles_per_chunk, needs_mask)

    in_map = lambda c, k, _tpc=tiles_per_chunk: (c * _tpc + k, 0)

    partials = pl.pallas_call(
        kernel,
        out_shape=jax.ShapeDtypeStruct((chunks, _SUBLANES, _LANES), jnp.float32),
        grid=(chunks, tiles_per_chunk),
        in_specs=[pl.BlockSpec((tile_r, _LANES), in_map),
                  pl.BlockSpec((tile_r, _LANES), in_map)],
        out_specs=pl.BlockSpec((1, _SUBLANES, _LANES), lambda c, k: (c, 0, 0)),
        compiler_params=pltpu.CompilerParams(
            dimension_semantics=("parallel", "arbitrary"),
            vmem_limit_bytes=32 * 1024 * 1024),
    )(x2d, t2d)

    return jnp.sum(partials) / batch_size


# ------------------------------- reference -------------------------------------

def _superloss_ref(logits, targets, C=10.0, lam=1.0, batch_size=1):
    """Pure-JAX reference with a higher-precision Lambert W (exact divisions)."""
    tau = math.log(C)
    x = logits.astype(jnp.float32)
    t = targets.astype(jnp.float32)
    l_i = (x - t) ** 2
    y = 0.5 * jnp.maximum(-2.0 / math.e, (l_i - tau) / lam)
    w = _lambertw0_ref(y)
    sigma = jnp.exp(-w)
    loss = (l_i - tau) * sigma + lam * jnp.log(sigma) ** 2
    return jnp.sum(loss) / batch_size


if __name__ == "__main__":
    key = jax.random.PRNGKey(0)
    k1, k2 = jax.random.split(key)
    # batch=2, channels=4, spatial=16x16 (NCHW-like), elementwise loss over all elems
    logits = jax.random.normal(k1, (2, 4, 16, 16), dtype=jnp.float32)
    targets = jax.random.normal(k2, (2, 4, 16, 16), dtype=jnp.float32)

    C, lam, batch_size = 10.0, 1.0, 2

    loss = superloss_pallas(logits, targets, C=C, lam=lam, batch_size=batch_size)
    loss = jax.block_until_ready(loss)

    ref = _superloss_ref(logits, targets, C=C, lam=lam, batch_size=batch_size)
    assert jnp.allclose(loss, ref, rtol=1e-4, atol=1e-3), (loss, ref)

    print("KERNEL_OK")
</pallas_src>

<mosaic_0001>
module attributes {stable_mosaic.version = 11 : i64} {
  func.func @kernel(%arg0: i32, %arg1: i32, %arg2: memref<16x128xf32, #tpu.memory_space<vmem>>, %arg3: memref<16x128xf32, #tpu.memory_space<vmem>>, %arg4: memref<1x8x128xf32, #tpu.memory_space<vmem>>) attributes {dimension_semantics = [#tpu.dimension_semantics<parallel>, #tpu.dimension_semantics<arbitrary>], iteration_bounds = array<i64: 1, 1>, scalar_prefetch = 0 : i64, scratch_operands = 0 : i64, tpu.core_type = #tpu.core_type<tc>, window_params = [{transform_indices = @transform_0, window_bounds = array<i64: 16, 128>}, {transform_indices = @transform_1, window_bounds = array<i64: 16, 128>}, {transform_indices = @transform_2, window_bounds = array<i64: 1, 8, 128>}]} {
    %c0_i32 = arith.constant 0 : i32
    %0 = arith.cmpi eq, %arg1, %c0_i32 : i32
    %1 = arith.extui %0 : i1 to i32
    %c0_i32_0 = arith.constant 0 : i32
    %2 = arith.cmpi ne, %1, %c0_i32_0 : i32
    scf.if %2 {
      %cst_35 = arith.constant 0.000000e+00 : f32
      %99 = vector.broadcast %cst_35 : f32 to vector<1x8x128xf32>
      %c0_36 = arith.constant 0 : index
      %c0_37 = arith.constant 0 : index
      %c0_38 = arith.constant 0 : index
      %100 = vector.load %arg4[%c0_36, %c0_37, %c0_38] : memref<1x8x128xf32, #tpu.memory_space<vmem>>, vector<1x8x128xf32>
      tpu.vector_store %arg4[%c0_36, %c0_37, %c0_38], %99 {strides = array<i32>} : memref<1x8x128xf32, #tpu.memory_space<vmem>>, vector<1x8x128xf32>,
    } else {
    }
    %c0 = arith.constant 0 : index
    %c0_1 = arith.constant 0 : index
    %3 = vector.load %arg2[%c0, %c0_1] : memref<16x128xf32, #tpu.memory_space<vmem>>, vector<16x128xf32>
    %c0_2 = arith.constant 0 : index
    %c0_3 = arith.constant 0 : index
    %4 = vector.load %arg3[%c0_2, %c0_3] : memref<16x128xf32, #tpu.memory_space<vmem>>, vector<16x128xf32>
    %5 = arith.subf %3, %4 : vector<16x128xf32>
    %6 = arith.mulf %5, %5 : vector<16x128xf32>
    %cst = arith.constant 2.30258512 : f32
    %7 = vector.broadcast %cst : f32 to vector<16x128xf32>
    %8 = arith.subf %6, %7 : vector<16x128xf32>
    %cst_4 = arith.constant 5.000000e-01 : f32
    %9 = vector.broadcast %cst_4 : f32 to vector<16x128xf32>
    %10 = arith.mulf %8, %9 : vector<16x128xf32>
    %cst_5 = arith.constant -0.36787945 : f32
    %11 = vector.broadcast %cst_5 : f32 to vector<16x128xf32>
    %12 = arith.maximumf %11, %10 : vector<16x128xf32>
    %cst_6 = arith.constant 5.43656349 : f32
    %13 = vector.broadcast %cst_6 : f32 to vector<16x128xf32>
    %14 = arith.mulf %13, %12 : vector<16x128xf32>
    %cst_7 = arith.constant 2.000000e+00 : f32
    %15 = vector.broadcast %cst_7 : f32 to vector<16x128xf32>
    %16 = arith.addf %14, %15 : vector<16x128xf32>
    %cst_8 = arith.constant 0.000000e+00 : f32
    %17 = vector.broadcast %cst_8 : f32 to vector<16x128xf32>
    %18 = arith.maximumf %16, %17 : vector<16x128xf32>
    %19 = math.sqrt %18 : vector<16x128xf32>
    %cst_9 = arith.constant 0.152777776 : f32
    %20 = vector.broadcast %cst_9 : f32 to vector<16x128xf32>
    %21 = arith.mulf %19, %20 : vector<16x128xf32>
    %cst_10 = arith.constant -0.333333343 : f32
    %22 = vector.broadcast %cst_10 : f32 to vector<16x128xf32>
    %23 = arith.addf %22, %21 : vector<16x128xf32>
    %24 = arith.mulf %19, %23 : vector<16x128xf32>
    %cst_11 = arith.constant 1.000000e+00 : f32
    %25 = vector.broadcast %cst_11 : f32 to vector<16x128xf32>
    %26 = arith.addf %25, %24 : vector<16x128xf32>
    %27 = arith.mulf %19, %26 : vector<16x128xf32>
    %cst_12 = arith.constant -1.000000e+00 : f32
    %28 = vector.broadcast %cst_12 : f32 to vector<16x128xf32>
    %29 = arith.addf %28, %27 : vector<16x128xf32>
    %30 = math.log1p %12 : vector<16x128xf32>
    %31 = math.log1p %30 : vector<16x128xf32>
    %cst_13 = arith.constant 2.000000e+00 : f32
    %32 = vector.broadcast %cst_13 : f32 to vector<16x128xf32>
    %33 = arith.addf %32, %30 : vector<16x128xf32>
    %34 = tpu.reciprocal %33 {approx = true} : vector<16x128xf32> -> vector<16x128xf32>
    %35 = arith.mulf %30, %31 : vector<16x128xf32>
    %36 = arith.mulf %35, %34 : vector<16x128xf32>
    %37 = arith.subf %30, %36 : vector<16x128xf32>
    %cst_14 = arith.constant -2.700000e-01 : f32
    %38 = vector.broadcast %cst_14 : f32 to vector<16x128xf32>
    %39 = arith.cmpf olt, %12, %38 : vector<16x128xf32>
    %40 = arith.select %39, %29, %37 : vector<16x128xi1>, vector<16x128xf32>
    %41 = math.exp %40 : vector<16x128xf32>
    %42 = arith.mulf %40, %41 : vector<16x128xf32>
    %43 = arith.subf %42, %12 : vector<16x128xf32>
    %cst_15 = arith.constant 1.000000e+00 : f32
    %44 = vector.broadcast %cst_15 : f32 to vector<16x128xf32>
    %45 = arith.addf %40, %44 : vector<16x128xf32>
    %cst_16 = arith.constant 2.000000e+00 : f32
    %46 = vector.broadcast %cst_16 : f32 to vector<16x128xf32>
    %47 = arith.mulf %46, %43 : vector<16x128xf32>
    %48 = arith.mulf %47, %45 : vector<16x128xf32>
    %cst_17 = arith.constant 2.000000e+00 : f32
    %49 = vector.broadcast %cst_17 : f32 to vector<16x128xf32>
    %50 = arith.mulf %49, %41 : vector<16x128xf32>
    %51 = arith.mulf %50, %45 : vector<16x128xf32>
    %52 = arith.mulf %51, %45 : vector<16x128xf32>
    %cst_18 = arith.constant 2.000000e+00 : f32
    %53 = vector.broadcast %cst_18 : f32 to vector<16x128xf32>
    %54 = arith.addf %40, %53 : vector<16x128xf32>
    %55 = arith.mulf %54, %43 : vector<16x128xf32>
    %56 = arith.subf %52, %55 : vector<16x128xf32>
    %cst_19 = arith.constant 1.000000e-30 : f32
    %57 = vector.broadcast %cst_19 : f32 to vector<16x128xf32>
    %58 = arith.maximumf %56, %57 : vector<16x128xf32>
    %59 = tpu.reciprocal %58 {approx = true} : vector<16x128xf32> -> vector<16x128xf32>
    %60 = arith.mulf %48, %59 : vector<16x128xf32>
    %61 = arith.subf %40, %60 : vector<16x128xf32>
    %cst_20 = arith.constant -1.000000e+00 : f32
    %62 = vector.broadcast %cst_20 : f32 to vector<16x128xf32>
    %63 = arith.maximumf %61, %62 : vector<16x128xf32>
    %64 = math.exp %63 : vector<16x128xf32>
    %65 = arith.mulf %63, %64 : vector<16x128xf32>
    %66 = arith.subf %65, %12 : vector<16x128xf32>
    %cst_21 = arith.constant 1.000000e+00 : f32
    %67 = vector.broadcast %cst_21 : f32 to vector<16x128xf32>
    %68 = arith.addf %63, %67 : vector<16x128xf32>
    %cst_22 = arith.constant 2.000000e+00 : f32
    %69 = vector.broadcast %cst_22 : f32 to vector<16x128xf32>
    %70 = arith.mulf %69, %66 : vector<16x128xf32>
    %71 = arith.mulf %70, %68 : vector<16x128xf32>
    %cst_23 = arith.constant 2.000000e+00 : f32
    %72 = vector.broadcast %cst_23 : f32 to vector<16x128xf32>
    %73 = arith.mulf %72, %64 : vector<16x128xf32>
    %74 = arith.mulf %73, %68 : vector<16x128xf32>
    %75 = arith.mulf %74, %68 : vector<16x128xf32>
    %cst_24 = arith.constant 2.000000e+00 : f32
    %76 = vector.broadcast %cst_24 : f32 to vector<16x128xf32>
    %77 = arith.addf %63, %76 : vector<16x128xf32>
    %78 = arith.mulf %77, %66 : vector<16x128xf32>
    %79 = arith.subf %75, %78 : vector<16x128xf32>
    %cst_25 = arith.constant 1.000000e-30 : f32
    %80 = vector.broadcast %cst_25 : f32 to vector<16x128xf32>
    %81 = arith.maximumf %79, %80 : vector<16x128xf32>
    %82 = tpu.reciprocal %81 {approx = true} : vector<16x128xf32> -> vector<16x128xf32>
    %83 = arith.mulf %71, %82 : vector<16x128xf32>
    %84 = arith.subf %63, %83 : vector<16x128xf32>
    %cst_26 = arith.constant -1.000000e+00 : f32
    %85 = vector.broadcast %cst_26 : f32 to vector<16x128xf32>
    %86 = arith.maximumf %84, %85 : vector<16x128xf32>
    %cst_27 = arith.constant 0.000000e+00 : f32
    %87 = vector.broadcast %cst_27 : f32 to vector<16x128xf32>
    %88 = arith.subf %87, %86 : vector<16x128xf32>
    %89 = math.exp %88 : vector<16x128xf32>
    %90 = arith.mulf %86, %86 : vector<16x128xf32>
    %91 = arith.mulf %8, %89 : vector<16x128xf32>
    %92 = arith.addf %91, %90 : vector<16x128xf32>
    %93 = vector.shape_cast %92 : vector<16x128xf32> to vector<2x8x128xf32>
    %cst_28 = arith.constant dense<0.000000e+00> : vector<8x128xf32>
    %94 = vector.multi_reduction <add>, %93, %cst_28 [0] : vector<2x8x128xf32> to vector<8x128xf32>
    %c0_29 = arith.constant 0 : index
    %c0_30 = arith.constant 0 : index
    %c0_31 = arith.constant 0 : index
    %95 = vector.load %arg4[%c0_29, %c0_30, %c0_31] : memref<1x8x128xf32, #tpu.memory_space<vmem>>, vector<1x8x128xf32>
    %96 = vector.shape_cast %94 : vector<8x128xf32> to vector<1x8x128xf32>
    %97 = arith.addf %95, %96 : vector<1x8x128xf32>
    %c0_32 = arith.constant 0 : index
    %c0_33 = arith.constant 0 : index
    %c0_34 = arith.constant 0 : index
    %98 = vector.load %arg4[%c0_32, %c0_33, %c0_34] : memref<1x8x128xf32, #tpu.memory_space<vmem>>, vector<1x8x128xf32>
    tpu.vector_store %arg4[%c0_32, %c0_33, %c0_34], %97 {strides = array<i32>} : memref<1x8x128xf32, #tpu.memory_space<vmem>>, vector<1x8x128xf32>,
    return
  }
  func.func @transform_0(%arg0: i32, %arg1: i32) -> (i32, i32) {
    %c1_i32 = arith.constant 1 : i32
    %0 = arith.muli %arg0, %c1_i32 : i32
    %1 = arith.addi %0, %arg1 : i32
    %c0_i32 = arith.constant 0 : i32
    %c0_i32_0 = arith.constant 0 : i32
    return %1, %c0_i32 : i32, i32
  }
  func.func @transform_1(%arg0: i32, %arg1: i32) -> (i32, i32) {
    %c1_i32 = arith.constant 1 : i32
    %0 = arith.muli %arg0, %c1_i32 : i32
    %1 = arith.addi %0, %arg1 : i32
    %c0_i32 = arith.constant 0 : i32
    %c0_i32_0 = arith.constant 0 : i32
    return %1, %c0_i32 : i32, i32
  }
  func.func @transform_2(%arg0: i32, %arg1: i32) -> (i32, i32, i32) {
    %c0_i32 = arith.constant 0 : i32
    %c0_i32_0 = arith.constant 0 : i32
    %c0_i32_1 = arith.constant 0 : i32
    return %arg0, %c0_i32, %c0_i32_0 : i32, i32, i32
  }
}

</mosaic_0001>

<bundles_post_ra>
// kernel: tpu_custom_call.1
= control target key start
LH: loop header
LB: loop body
LE: loop exit
PB: predicated region body
PF: predicated region fallthrough
CT: control target
= control target key end

     0   :  { %7 = vsyncpa [#allocation3], 0  ;;  %s433_s0 = inlined_call_operand.hbm [shape: f32[16,128], index: 0, kind: input, shape index: {}]   ;;  %s434_s1 = inlined_call_operand.hbm [shape: f32[16,128], index: 1, kind: input, shape index: {}]   ;;  %s435_s2 = inlined_call_operand.hbm [shape: f32[1,8,128], index: 2, kind: output, shape index: {}]  }
   0x1   :  { %8 = vsyncpa [#allocation6], 0 }
   0x2   :  { %9 = vsyncpa [#allocation4], 0  ;;  %s367_s9 = smov [#allocation2]  }
   0x3   :  { %s19_s10 = sshll.u32 %s367_s9, 4  ;;  %s20_s10 = int_to_ptr.vmem [resolvable:$true] %s19_s10 }
   0x4   :  { %s309_s11 = scalar_lea.vmem %s20_s10, 256  ;;  %p314_p1 = scmp.lt.s32.totalorder %s20_s10, %s20_s10 }
   0x5   :  { %p310_p0 = scmp.ne.s32.totalorder %s20_s10, %s309_s11  ;;  %p315_p2 = scmp.lt.s32.totalorder %s309_s11, %s309_s11 }
   0x7   :  { %p316_p3 = por %p315_p2, %p314_p1 }
   0x9   :  { %p317_p4 = pnand %p316_p3, %p310_p0 }
   0xb   :  { %320 = shalt.err (!%p317_p4)
}
   0xc   :  { %s368_s12 = smov 128   ;;  %s369_s13 = smov 8  }
   0xd   :  { %25 = dma.hbm_to_vmem [thread:$0]  %s433_s0, 256, %s20_s10, [#allocation3], %s368_s12, %s368_s12, %s369_s13  }
   0xe   :  { %s370_s16 = smov [#allocation5]  }
   0xf   :  { %s35_s17 = sshll.u32 %s370_s16, 4  ;;  %s36_s17 = int_to_ptr.vmem [resolvable:$true] %s35_s17 }
  0x10   :  { %s329_s18 = scalar_lea.vmem %s36_s17, 256  ;;  %p334_p6 = scmp.lt.s32.totalorder %s36_s17, %s36_s17 }
  0x11   :  { %p330_p5 = scmp.ne.s32.totalorder %s36_s17, %s329_s18  ;;  %p335_p7 = scmp.lt.s32.totalorder %s329_s18, %s329_s18 }
  0x13   :  { %p336_p8 = por %p335_p7, %p334_p6 }
  0x15   :  { %p337_p9 = pnand %p336_p8, %p330_p5 }
  0x17   :  { %340 = shalt.err (!%p337_p9)
}
  0x18   :  { %41 = dma.hbm_to_vmem [thread:$0]  %s434_s1, 256, %s36_s17, [#allocation6], %s368_s12, %s368_s12, %s369_s13  }
  0x19   :  { %361 = dma.done.wait [#allocation3], 256  }
  0x1a   :  { %362 = vsyncadd [#allocation3], 4294967040 }
  0x1b   :  { %363 = dma.done.wait [#allocation6], 256  }
  0x1c   :  { %364 = vsyncadd [#allocation6], 4294967040  ;;  %v57_v0 = vld [vmem:[#allocation2] sm:$0xff]  ;;  %v58_v1 = vld [vmem:[#allocation2 + $0x8] sm:$0xff]  ;;  %s371_s0 = smov [#allocation7]  }
  0x1d   :  { %v59_v2 = vld [vmem:[#allocation5] sm:$0xff]  ;;  %v60_v3 = vld [vmem:[#allocation5 + $0x8] sm:$0xff]  ;;  %s247_s1 = sshll.u32 %s371_s0, 4  ;;  %s248_s1 = int_to_ptr.vmem [resolvable:$true] %s247_s1 }
  0x1e   :  { %v61_v4 = vsub.f32 %v57_v0, %v59_v2  ;;  %v62_v5 = vsub.f32 %v58_v1, %v60_v3  ;;  %s341_s21 = scalar_lea.vmem %s248_s1, 128  ;;  %p346_p11 = scmp.lt.s32.totalorder %s248_s1, %s248_s1 }
  0x1f   :  { %p342_p10 = scmp.ne.s32.totalorder %s248_s1, %s341_s21  ;;  %p347_p12 = scmp.lt.s32.totalorder %s341_s21, %s341_s21 }
  0x20   :  { %v63_v6 = vmul.f32 %v61_v4, %v61_v4  ;;  %v64_v7 = vmul.f32 %v62_v5, %v62_v5 }
  0x21   :  { %p348_p13 = por %p347_p12, %p346_p11 }
  0x22   :  { %v393_v8 = vadd.f32 -2.3025851, %v63_v6  ;;  %v395_v9 = vadd.f32 -2.3025851, %v64_v7 }
  0x23   :  { %p349_p0 = pnand %p348_p13, %p342_p10 }
  0x24   :  { %v67_v10 = vmul.f32 0.5, %v393_v8  ;;  %v68_v11 = vmul.f32 0.5, %v395_v9 }
  0x26   :  { %v399_v12 = vmax.f32 %v67_v10, -0.36787945  ;;  %v401_v13 = vmax.f32 %v68_v11, -0.36787945 }
  0x28   :  { %v71_v14 = vmul.f32 5.4365635, %v399_v12  ;;  %v103_v15 = vadd.f32 1.0, %v399_v12  ;;  %v72_v16 = vmul.f32 5.4365635, %v401_v13  ;;  %v112_v17 = vadd.f32 1.0, %v401_v13 }
  0x29   :  { %v106_v22 = vmul.f32 -0.5, %v399_v12  ;;  %v115_v23 = vmul.f32 -0.5, %v401_v13  ;;  %v109_v25 = vand.u32 2147483647, %v399_v12  ;;  %v118_v27 = vand.u32 2147483647, %v401_v13 }
  0x2a   :  { %v73_v18 = vadd.f32 2.0, %v71_v14  ;;  %265 = vlog2.f32 %v103_v15  ;;  %v74_v19 = vadd.f32 2.0, %v72_v16  ;;  %vm149_vm8 = vcmp.lt.f32.partialorder %v399_v12, -0.27 }
  0x2b   :  { %267 = vlog2.f32 %v112_v17  ;;  %v107_v24 = vadd.f32 1.0, %v106_v22  ;;  %v116_v26 = vadd.f32 1.0, %v115_v23  ;;  %vm110_vm0 = vcmp.lt.f32.partialorder %v109_v25, 0.0004427343 }
  0x2c   :  { %v75_v20 = vmax.f32 %v73_v18, 0.0  ;;  %v76_v21 = vmax.f32 %v74_v19, 0.0  ;;  %vm119_vm1 = vcmp.lt.f32.partialorder %v118_v27, 0.0004427343  ;;  %vm150_vm9 = vcmp.lt.f32.partialorder %v401_v13, -0.27 }
  0x2d   :  { %v108_v28 = vmul.f32 %v107_v24, %v399_v12  ;;  %v117_v30 = vmul.f32 %v116_v26, %v401_v13 }
  0x2e   :  { %269 = vrsqrt.f32 %v75_v20  ;;  %vm79_vm2 = vcmp.eq.f32.partialorder %v75_v20, inf  ;;  %vm81_vm3 = vcmp.eq.f32.partialorder %v75_v20, 0.0  ;;  %v82_v36 = vand.u32 2147483648, %v75_v20 }
  0x2f   :  { %271 = vrsqrt.f32 %v76_v21  ;;  %vm86_vm4 = vcmp.eq.f32.partialorder %v76_v21, inf  ;;  %v89_v41 = vand.u32 2147483648, %v76_v21  ;;  %vm88_vm5 = vcmp.eq.f32.partialorder %v76_v21, 0.0 }
  0x37   :  { %v266_v29 = vpop.eup %265 }
  0x38   :  { %v268_v31 = vpop.eup %267  ;;  %v105_v32 = vmul.f32 0.6931472, %v266_v29 }
  0x39   :  { %v114_v33 = vmul.f32 0.6931472, %v268_v31 }
  0x3a   :  { %v413_v34 = vsel %vm110_vm0, %v108_v28, %v105_v32 }
  0x3b   :  { %v270_v35 = vpop.eup %269  ;;  %v120_v37 = vsel %vm119_vm1, %v117_v30, %v114_v33  ;;  %v121_v38 = vadd.f32 1.0, %v413_v34  ;;  %v139_v47 = vadd.f32 2.0, %v413_v34  ;;  %v124_v52 = vmul.f32 -0.5, %v413_v34 }
  0x3c   :  { %v272_v39 = vpop.eup %271  ;;  %v78_v40 = vmul.f32 %v270_v35, %v75_v20  ;;  %v130_v42 = vadd.f32 1.0, %v120_v37  ;;  %v140_v50 = vadd.f32 2.0, %v120_v37  ;;  %v133_v54 = vmul.f32 -0.5, %v120_v37 }
  0x3d   :  { %v85_v43 = vmul.f32 %v272_v39, %v76_v21  ;;  %273 = vlog2.f32 %v121_v38  ;;  %v125_v58 = vadd.f32 1.0, %v124_v52  ;;  %v127_v59 = vand.u32 2147483647, %v413_v34 }
  0x3e   :  { %v80_v44 = vsel %vm79_vm2, %v75_v20, %v78_v40  ;;  %275 = vlog2.f32 %v130_v42  ;;  %v134_v60 = vadd.f32 1.0, %v133_v54  ;;  %v136_v61 = vand.u32 2147483647, %v120_v37 }
  0x3f   :  { %v83_v45 = vsel %vm81_vm3, %v82_v36, %v80_v44  ;;  %v87_v46 = vsel %vm86_vm4, %v76_v21, %v85_v43  ;;  %277 = vrcp.f32 %v139_v47  ;;  %v126_v0 = vmul.f32 %v125_v58, %v413_v34 }
  0x40   :  { %v90_v48 = vsel %vm88_vm5, %v89_v41, %v87_v46  ;;  %v91_v49 = vmul.f32 0.15277778, %v83_v45  ;;  %279 = vrcp.f32 %v140_v50  ;;  %vm128_vm6 = vcmp.lt.f32.partialorder %v127_v59, 0.0004427343 }
  0x41   :  { %v92_v51 = vmul.f32 0.15277778, %v90_v48  ;;  %v135_v2 = vmul.f32 %v134_v60, %v120_v37  ;;  %vm137_vm7 = vcmp.lt.f32.partialorder %v136_v61, 0.0004427343 }
  0x42   :  { %v93_v53 = vadd.f32 -0.33333334, %v91_v49 }
  0x43   :  { %v94_v55 = vadd.f32 -0.33333334, %v92_v51 }
  0x44   :  { %v95_v56 = vmul.f32 %v93_v53, %v83_v45 }
  0x45   :  { %v96_v57 = vmul.f32 %v94_v55, %v90_v48 }
  0x46   :  { %v97_v62 = vadd.f32 1.0, %v95_v56 }
  0x47   :  { %v98_v63 = vadd.f32 1.0, %v96_v57 }
  0x48   :  { %v99_v5 = vmul.f32 %v97_v62, %v83_v45 }
  0x49   :  { %v100_v7 = vmul.f32 %v98_v63, %v90_v48 }
  0x4a   :  { %v274_v1 = vpop.eup %273  ;;  %v101_v18 = vadd.f32 -1.0, %v99_v5 }
  0x4b   :  { %v276_v3 = vpop.eup %275  ;;  %v123_v4 = vmul.f32 0.6931472, %v274_v1  ;;  %v102_v20 = vadd.f32 -1.0, %v100_v7 }
  0x4c   :  { %v132_v6 = vmul.f32 0.6931472, %v276_v3  ;;  %v278_v11 = vpop.eup %277 }
  0x4d   :  { %v129_v10 = vsel %vm128_vm6, %v126_v0, %v123_v4  ;;  %v280_v16 = vpop.eup %279 }
  0x4e   :  { %v138_v14 = vsel %vm137_vm7, %v135_v2, %v132_v6  ;;  %v143_v15 = vmul.f32 %v129_v10, %v413_v34 }
  0x4f   :  { %v144_v17 = vmul.f32 %v138_v14, %v120_v37 }
  0x50   :  { %v145_v19 = vmul.f32 %v278_v11, %v143_v15 }
  0x51   :  { %v146_v21 = vmul.f32 %v280_v16, %v144_v17 }
  0x52   :  { %v147_v22 = vsub.f32 %v413_v34, %v145_v19 }
  0x53   :  { %v148_v23 = vsub.f32 %v120_v37, %v146_v21 }
  0x54   :  { %v151_v24 = vsel %vm149_vm8, %v101_v18, %v147_v22 }
  0x55   :  { %v152_v25 = vsel %vm150_vm9, %v102_v20, %v148_v23  ;;  %v153_v26 = vmul.f32 1.442695, %v151_v24  ;;  %v161_v28 = vadd.f32 1.0, %v151_v24  ;;  %v173_v35 = vadd.f32 2.0, %v151_v24 }
  0x56   :  { %v155_v27 = vmul.f32 1.442695, %v152_v25  ;;  %v162_v30 = vadd.f32 1.0, %v152_v25  ;;  %v174_v39 = vadd.f32 2.0, %v152_v25 }
  0x57   :  { %281 = vpow2.f32 %v153_v26 }
  0x58   :  { %283 = vpow2.f32 %v155_v27 }
  0x64   :  { %v282_v29 = vpop.eup %281 }
  0x65   :  { %v284_v31 = vpop.eup %283  ;;  %v157_v32 = vmul.f32 %v282_v29, %v151_v24  ;;  %v167_v33 = vmul.f32 2.0, %v282_v29 }
  0x66   :  { %v158_v36 = vmul.f32 %v284_v31, %v152_v25  ;;  %v168_v38 = vmul.f32 2.0, %v284_v31 }
  0x67   :  { %v159_v34 = vsub.f32 %v157_v32, %v399_v12  ;;  %v169_v40 = vmul.f32 %v167_v33, %v161_v28 }
  0x68   :  { %v160_v37 = vsub.f32 %v158_v36, %v401_v13  ;;  %v170_v41 = vmul.f32 %v168_v38, %v162_v30 }
  0x69   :  { %v171_v42 = vmul.f32 %v169_v40, %v161_v28  ;;  %v175_v43 = vmul.f32 %v173_v35, %v159_v34  ;;  %v163_v50 = vmul.f32 2.0, %v159_v34 }
  0x6a   :  { %v172_v44 = vmul.f32 %v170_v41, %v162_v30  ;;  %v176_v45 = vmul.f32 %v174_v39, %v160_v37  ;;  %v164_v51 = vmul.f32 2.0, %v160_v37 }
  0x6b   :  { %v177_v46 = vsub.f32 %v171_v42, %v175_v43  ;;  %v165_v52 = vmul.f32 %v163_v50, %v161_v28 }
  0x6c   :  { %v178_v47 = vsub.f32 %v172_v44, %v176_v45  ;;  %v166_v53 = vmul.f32 %v164_v51, %v162_v30 }
  0x6d   :  { %v179_v48 = vmax.f32 %v177_v46, 1e-30 }
  0x6e   :  { %v180_v49 = vmax.f32 %v178_v47, 1e-30 }
  0x6f   :  { %285 = vrcp.f32 %v179_v48 }
  0x70   :  { %287 = vrcp.f32 %v180_v49 }
  0x7c   :  { %v286_v54 = vpop.eup %285 }
  0x7d   :  { %v288_v55 = vpop.eup %287  ;;  %v183_v56 = vmul.f32 %v286_v54, %v165_v52 }
  0x7e   :  { %v184_v57 = vmul.f32 %v288_v55, %v166_v53 }
  0x7f   :  { %v185_v58 = vsub.f32 %v151_v24, %v183_v56 }
  0x80   :  { %v186_v59 = vsub.f32 %v152_v25, %v184_v57 }
  0x81   :  { %v187_v60 = vmax.f32 %v185_v58, -1.0 }
  0x82   :  { %v188_v61 = vmax.f32 %v186_v59, -1.0 }
  0x83   :  { %v189_v62 = vmul.f32 1.442695, %v187_v60  ;;  %v197_v0 = vadd.f32 1.0, %v187_v60  ;;  %v209_v6 = vadd.f32 2.0, %v187_v60 }
  0x84   :  { %v191_v63 = vmul.f32 1.442695, %v188_v61  ;;  %v198_v2 = vadd.f32 1.0, %v188_v61  ;;  %v210_v11 = vadd.f32 2.0, %v188_v61 }
  0x85   :  { %289 = vpow2.f32 %v189_v62 }
  0x86   :  { %291 = vpow2.f32 %v191_v63 }
  0x92   :  { %v290_v1 = vpop.eup %289 }
  0x93   :  { %v292_v3 = vpop.eup %291  ;;  %v193_v4 = vmul.f32 %v290_v1, %v187_v60  ;;  %v203_v5 = vmul.f32 2.0, %v290_v1 }
  0x94   :  { %v194_v7 = vmul.f32 %v292_v3, %v188_v61  ;;  %v204_v10 = vmul.f32 2.0, %v292_v3 }
  0x95   :  { %v195_v14 = vsub.f32 %v193_v4, %v399_v12  ;;  %v205_v15 = vmul.f32 %v203_v5, %v197_v0 }
  0x96   :  { %v196_v16 = vsub.f32 %v194_v7, %v401_v13  ;;  %v206_v17 = vmul.f32 %v204_v10, %v198_v2 }
  0x97   :  { %v207_v18 = vmul.f32 %v205_v15, %v197_v0  ;;  %v211_v19 = vmul.f32 %v209_v6, %v195_v14  ;;  %v199_v26 = vmul.f32 2.0, %v195_v14 }
  0x98   :  { %v208_v20 = vmul.f32 %v206_v17, %v198_v2  ;;  %v212_v21 = vmul.f32 %v210_v11, %v196_v16  ;;  %v200_v27 = vmul.f32 2.0, %v196_v16 }
  0x99   :  { %v213_v22 = vsub.f32 %v207_v18, %v211_v19  ;;  %v201_v28 = vmul.f32 %v199_v26, %v197_v0 }
  0x9a   :  { %v214_v23 = vsub.f32 %v208_v20, %v212_v21  ;;  %v202_v29 = vmul.f32 %v200_v27, %v198_v2 }
  0x9b   :  { %v215_v24 = vmax.f32 %v213_v22, 1e-30 }
  0x9c   :  { %v216_v25 = vmax.f32 %v214_v23, 1e-30 }
  0x9d   :  { %293 = vrcp.f32 %v215_v24 }
  0x9e   :  { %295 = vrcp.f32 %v216_v25 }
  0xaa   :  { %v294_v30 = vpop.eup %293 }
  0xab   :  { %v296_v12 = vpop.eup %295  ;;  %v219_v31 = vmul.f32 %v294_v30, %v201_v28 }
  0xac   :  { %v220_v32 = vmul.f32 %v296_v12, %v202_v29 }
  0xad   :  { %v221_v13 = vsub.f32 %v187_v60, %v219_v31 }
  0xae   :  { %v222_v33 = vsub.f32 %v188_v61, %v220_v32 }
  0xaf   :  { %v223_v35 = vmax.f32 %v221_v13, -1.0 }
  0xb0   :  { %v224_v36 = vmax.f32 %v222_v33, -1.0 }
  0xb1   :  { %v225_v38 = vsub.f32 0.0, %v223_v35  ;;  %v231_v37 = vmul.f32 %v223_v35, %v223_v35 }
  0xb2   :  { %v226_v39 = vsub.f32 0.0, %v224_v36  ;;  %v232_v42 = vmul.f32 %v224_v36, %v224_v36 }
  0xb3   :  { %v227_v34 = vmul.f32 1.442695, %v225_v38 }
  0xb4   :  { %v229_v40 = vmul.f32 1.442695, %v226_v39 }
  0xb5   :  { %297 = vpow2.f32 %v227_v34 }
  0xb6   :  { %299 = vpow2.f32 %v229_v40 }
  0xc2   :  { %v298_v41 = vpop.eup %297 }
  0xc3   :  { %v300_v43 = vpop.eup %299  ;;  %v233_v44 = vmul.f32 %v298_v41, %v393_v8 }
  0xc4   :  { %v234_v45 = vmul.f32 %v300_v43, %v395_v9 }
  0xc5   :  { %v235_v46 = vadd.f32 %v233_v44, %v231_v37 }
  0xc6   :  { %v236_v47 = vadd.f32 %v234_v45, %v232_v42 }
  0xc8   :  { %v237_v48 = vadd.f32 %v236_v47, %v235_v46 }
  0xca   :  { %240 = vst [vmem:[#allocation7] sm:$0xff] %v237_v48 }
  0xcb   :  { %352 = shalt.err (!%p349_p0)
}
  0xcc   :  { %250 = dma.vmem_to_hbm [thread:$0]  %s248_s1, 128, %s435_s2, [#allocation4]  }
  0xcd   :  { %365 = dma.done.wait [#allocation4], 128  }
  0xce   :  { %366 = vsyncadd [#allocation4], 4294967168 }
  0xcf   :  { %254 = vsyncpa [#allocation3], 1 }
  0xd0   :  { %255 = vsyncpa [#allocation6], 1 }
  0xd1   :  { %256 = vsyncpa [#allocation4], 1 }

</bundles_post_ra>
